<compile_context>
chip_gen: v7x
topology: tpu7x:2x2x1
jax: 0.10.0
libtpu: 0.0.40
codegen_flags: <defaults>
</compile_context>

<pallas_src>
import jax
import jax.numpy as jnp
from jax import lax
from jax.experimental import pallas as pl
from jax.experimental.pallas import tpu as pltpu


OUT_CH = 256                       # hard-coded in the PyTorch module
_VMEM_LIMIT = 48 * 1024 * 1024     # headroom below v7x's 64 MiB physical VMEM


def _cparams(*sem):
    return pltpu.CompilerParams(dimension_semantics=sem,
                                vmem_limit_bytes=_VMEM_LIMIT)


def _round_up(x, m):
    return ((x + m - 1) // m) * m


def _pick_row_tile(total, target):
    """Largest row tile <= target that divides `total` and keeps blocks 8-aligned."""
    if total <= target:
        return total
    for cand in range(target, 7, -1):
        if total % cand == 0 and cand % 8 == 0:
            return cand
    return total


# ----------------------------- Pallas kernels ------------------------------

def _conv1x1_kernel(x_ref, w_ref, b_ref, o_ref):
    # x_ref: (TM, Cin)   w_ref: (Cin, Cout)   b_ref: (1, Cout)
    acc = jnp.dot(x_ref[...], w_ref[...], preferred_element_type=jnp.float32)
    o_ref[...] = (acc + b_ref[...]).astype(o_ref.dtype)


def _conv3x3_kernel(x_ref, w_ref, b_ref, o_ref, acc_ref):
    # x_ref: (1, TH+2, W+2, Cin) halo row tile    w_ref: (3, 3, Cin, Cout)
    # acc_ref: VMEM f32 scratch (TH*W, Cout)  -- keeps the accumulator out of vregs
    th, wd = o_ref.shape[1], o_ref.shape[2]
    cin = x_ref.shape[-1]
    cout = w_ref.shape[-1]
    xp = x_ref[0]                                    # (TH+2, W+2, Cin)
    first = True
    for dx in range(3):                              # only 3 sublane slices (not 9)
        col = xp[:, dx:dx + wd, :]                   # (TH+2, W, Cin)
        for dy in range(3):
            patch = col[dy:dy + th].reshape(th * wd, cin)   # leading-axis slice: cheap
            contrib = jnp.dot(patch, w_ref[dy, dx],
                              preferred_element_type=jnp.float32)
            if first:
                acc_ref[...] = contrib
                first = False
            else:
                acc_ref[...] += contrib
    out = acc_ref[...] + b_ref[...]
    o_ref[0] = out.reshape(th, wd, cout).astype(o_ref.dtype)


def _hup_kernel(x_ref, rh_ref, o_ref):
    # H-direction bilinear upsample as a 2D matmul on the lane-dense (Hi, Wi*C) view.
    o_ref[0] = jnp.dot(rh_ref[...], x_ref[0],
                       preferred_element_type=jnp.float32).astype(o_ref.dtype)


def _wup_lateral_kernel(y_ref, rw_ref, lat_ref, wl_ref, bl_ref, o_ref):
    # y_ref: (1, TH, Wi, C) H-upsampled rows    lat_ref: (1, TH, Wo, Cl) raw lateral
    th, wi, c = y_ref.shape[1], y_ref.shape[2], y_ref.shape[3]
    wo = rw_ref.shape[0]
    cl = wl_ref.shape[0]
    # W-direction bilinear upsample: batched matmul over the TH output rows (MXU).
    rwb = jnp.broadcast_to(rw_ref[...], (th, wo, wi))
    up = jnp.einsum("row,rwc->roc", rwb, y_ref[0],
                    preferred_element_type=jnp.float32)          # (TH, Wo, C)
    # Fused lateral 1x1 conv + add: the lateral feature map never round-trips HBM.
    lat = jnp.dot(lat_ref[0].reshape(th * wo, cl), wl_ref[...],
                  preferred_element_type=jnp.float32) + bl_ref[...]
    o_ref[0] = (up + lat.reshape(th, wo, c)).astype(o_ref.dtype)


def _p6p7_kernel(x6_ref, x7_ref, w6_ref, b6_ref, w7_ref, b7_ref, o6_ref, o7_ref):
    # Tiny, launch-bound stride-2 1x1 convs fused into a single call.
    p6 = jnp.dot(x6_ref[...], w6_ref[...],
                 preferred_element_type=jnp.float32) + b6_ref[...]
    o6_ref[...] = p6.astype(o6_ref.dtype)
    # p7 only needs the stride-4 subsample of c5; recompute those (tiny) p6 rows.
    p6s = jnp.dot(x7_ref[...], w6_ref[...],
                  preferred_element_type=jnp.float32) + b6_ref[...]
    p7 = jnp.dot(p6s, w7_ref[...],
                 preferred_element_type=jnp.float32) + b7_ref[...]
    o7_ref[...] = p7.astype(o7_ref.dtype)


# ------------------------------ wrappers ------------------------------------

def conv1x1(x, w, b, *, tm=512):
    """Pointwise conv as a tiled matmul over the flattened N*H*W pixels."""
    n, h, wd, cin = x.shape
    cout = w.shape[1]
    m = n * h * wd
    xf = x.reshape(m, cin)
    tm = min(tm, _round_up(m, 8))
    m_pad = _round_up(m, tm)
    if m_pad != m:
        xf = jnp.pad(xf, ((0, m_pad - m), (0, 0)))
    out = pl.pallas_call(
        _conv1x1_kernel,
        grid=(m_pad // tm,),
        in_specs=[
            pl.BlockSpec((tm, cin), lambda i: (i, 0)),
            pl.BlockSpec((cin, cout), lambda i: (0, 0)),
            pl.BlockSpec((1, cout), lambda i: (0, 0)),
        ],
        out_specs=pl.BlockSpec((tm, cout), lambda i: (i, 0)),
        out_shape=jax.ShapeDtypeStruct((m_pad, cout), x.dtype),
        compiler_params=_cparams("parallel"),
    )(xf, w, b.reshape(1, cout))
    return out[:m].reshape(n, h, wd, cout)


def conv3x3(x, w, b, *, tile_h=16):
    """3x3 stride-1 'same' conv, row-tiled with a 1-row halo per tile."""
    n, h, wd, cin = x.shape
    cout = w.shape[-1]
    th = min(tile_h, h)
    n_t = -(-h // th)
    h_pad = n_t * th
    # 1 halo row top, halo + alignment rows bottom, 1 column halo each side.
    xp = jnp.pad(x, ((0, 0), (1, 1 + h_pad - h), (1, 1), (0, 0)))
    # Materialize overlapping (th+2)-row halo tiles wrapper-side so every Pallas
    # block stays a plain rectangle (2 duplicated rows per th-row tile).
    # TODO(synk): a manual make_async_copy halo DMA would avoid this duplicated copy.
    rows = jnp.arange(n_t)[:, None] * th + jnp.arange(th + 2)[None, :]
    xt = xp[:, rows].reshape(n * n_t, th + 2, wd + 2, cin)
    out = pl.pallas_call(
        _conv3x3_kernel,
        grid=(n * n_t,),
        in_specs=[
            pl.BlockSpec((1, th + 2, wd + 2, cin), lambda i: (i, 0, 0, 0)),
            pl.BlockSpec((3, 3, cin, cout), lambda i: (0, 0, 0, 0)),
            pl.BlockSpec((1, cout), lambda i: (0, 0)),
        ],
        out_specs=pl.BlockSpec((1, th, wd, cout), lambda i: (i, 0, 0, 0)),
        out_shape=jax.ShapeDtypeStruct((n * n_t, th, wd, cout), x.dtype),
        scratch_shapes=[pltpu.VMEM((th * wd, cout), jnp.float32)],
        compiler_params=_cparams("parallel"),
    )(xt, w, b.reshape(1, cout))
    return out.reshape(n, h_pad, wd, cout)[:, :h]


def upsample_add_lateral(xc, lat_raw, wl, bl, rh, rw, *, tile_ho=16):
    """bilinear_upsample(xc) + conv1x1(lat_raw), separable + fused lateral conv."""
    n, hi, wi, c = xc.shape
    _, ho, wo, cl = lat_raw.shape
    assert rh.shape == (ho, hi) and rw.shape == (wo, wi)
    th = _pick_row_tile(ho, tile_ho)
    # pass 1: H-direction upsample on the (free, contiguous) lane-dense view.
    xc2 = xc.reshape(n, hi, wi * c)
    y = pl.pallas_call(
        _hup_kernel,
        grid=(n, ho // th),
        in_specs=[
            pl.BlockSpec((1, hi, wi * c), lambda b, t: (b, 0, 0)),
            pl.BlockSpec((th, hi), lambda b, t: (t, 0)),
        ],
        out_specs=pl.BlockSpec((1, th, wi * c), lambda b, t: (b, t, 0)),
        out_shape=jax.ShapeDtypeStruct((n, ho, wi * c), xc.dtype),
        compiler_params=_cparams("parallel", "parallel"),
    )(xc2, rh)
    y = y.reshape(n, ho, wi, c)     # free (contiguous) reshape in the wrapper
    # pass 2: W-direction upsample + fused lateral 1x1 conv + add.
    out = pl.pallas_call(
        _wup_lateral_kernel,
        grid=(n, ho // th),
        in_specs=[
            pl.BlockSpec((1, th, wi, c), lambda b, t: (b, t, 0, 0)),
            pl.BlockSpec((wo, wi), lambda b, t: (0, 0)),
            pl.BlockSpec((1, th, wo, cl), lambda b, t: (b, t, 0, 0)),
            pl.BlockSpec((cl, c), lambda b, t: (0, 0)),
            pl.BlockSpec((1, c), lambda b, t: (0, 0)),
        ],
        out_specs=pl.BlockSpec((1, th, wo, c), lambda b, t: (b, t, 0, 0)),
        out_shape=jax.ShapeDtypeStruct((n, ho, wo, c), xc.dtype),
        compiler_params=_cparams("parallel", "parallel"),
    )(y, rw, lat_raw, wl, bl.reshape(1, c))
    return out


def p6_p7(c5, w6, b6, w7, b7):
    """Fused stride-2 / stride-4 1x1 convs (p6, p7) in a single tiny pallas_call."""
    n, _, _, cin = c5.shape
    x6 = c5[:, ::2, ::2, :]
    x7 = c5[:, ::4, ::4, :]
    n6h, n6w = x6.shape[1], x6.shape[2]
    n7h, n7w = x7.shape[1], x7.shape[2]
    x6f = x6.reshape(n * n6h * n6w, cin)
    x7f = x7.reshape(n * n7h * n7w, cin)
    cout = w6.shape[1]
    m6, m7 = x6f.shape[0], x7f.shape[0]
    o6, o7 = pl.pallas_call(
        _p6p7_kernel,
        grid=(1,),
        in_specs=[
            pl.BlockSpec((m6, cin), lambda i: (0, 0)),
            pl.BlockSpec((m7, cin), lambda i: (0, 0)),
            pl.BlockSpec((cin, cout), lambda i: (0, 0)),
            pl.BlockSpec((1, cout), lambda i: (0, 0)),
            pl.BlockSpec((cout, cout), lambda i: (0, 0)),
            pl.BlockSpec((1, cout), lambda i: (0, 0)),
        ],
        out_specs=[
            pl.BlockSpec((m6, cout), lambda i: (0, 0)),
            pl.BlockSpec((m7, cout), lambda i: (0, 0)),
        ],
        out_shape=(jax.ShapeDtypeStruct((m6, cout), c5.dtype),
                   jax.ShapeDtypeStruct((m7, cout), c5.dtype)),
        compiler_params=_cparams("arbitrary"),
    )(x6f, x7f, w6, b6.reshape(1, cout), w7, b7.reshape(1, cout))
    return o6.reshape(n, n6h, n6w, cout), o7.reshape(n, n7h, n7w, cout)


# ------------------------------ FPN module ----------------------------------

def init_fpn_params(key, input_channels):
    c3c, c4c, c5c = input_channels
    specs = {
        "c5_conv1": (1, c5c, OUT_CH),
        "c5_conv2": (3, OUT_CH, OUT_CH),
        "c5_conv3": (1, c5c, OUT_CH),
        "c5_conv4": (1, OUT_CH, OUT_CH),
        "c4_conv1": (1, c4c, OUT_CH),
        "c4_conv2": (3, OUT_CH, OUT_CH),
        "c3_conv1": (1, c3c, OUT_CH),
        "c3_conv2": (3, OUT_CH, OUT_CH),
    }
    params = {}
    keys = jax.random.split(key, 2 * len(specs))
    for i, (name, (k, cin, cout)) in enumerate(sorted(specs.items())):
        wk, bk = keys[2 * i], keys[2 * i + 1]
        scale = 1.0 / jnp.sqrt(k * k * cin)
        shape = (cin, cout) if k == 1 else (k, k, cin, cout)
        params[name + "_w"] = jax.random.normal(wk, shape, jnp.float32) * scale
        params[name + "_b"] = jax.random.normal(bk, (cout,), jnp.float32) * 0.01
    return params


def fpn_forward(params, c3, c4, c5, rh45, rw45, rh34, rw34):
    """Inputs in NHWC. Returns (p3, p4, p5, p6, p7) in NHWC."""
    # TODO(synk): the PyTorch module calls an undefined helper
    # `padding(c4_input_channels, 1, 2)` for the stride-2 1x1 convs; the natural
    # value for a kernel_size-1 conv is 0, which is what is implemented here.
    # TODO(synk): bf16 operands would roughly double MXU throughput on v6e/v7x but
    # would not meet the 1e-3 f32 test tolerance used below, so f32 is kept.
    p6, p7 = p6_p7(c5, params["c5_conv3_w"], params["c5_conv3_b"],
                   params["c5_conv4_w"], params["c5_conv4_b"])

    c5_conv = conv1x1(c5, params["c5_conv1_w"], params["c5_conv1_b"])
    p5 = conv3x3(c5_conv, params["c5_conv2_w"], params["c5_conv2_b"])

    c5_c4 = upsample_add_lateral(c5_conv, c4, params["c4_conv1_w"],
                                 params["c4_conv1_b"], rh45, rw45)
    p4 = conv3x3(c5_c4, params["c4_conv2_w"], params["c4_conv2_b"])

    c4_c3 = upsample_add_lateral(c5_c4, c3, params["c3_conv1_w"],
                                 params["c3_conv1_b"], rh34, rw34)
    p3 = conv3x3(c4_c3, params["c3_conv2_w"], params["c3_conv2_b"])
    return p3, p4, p5, p6, p7


def bilinear_matrix(out_size, in_size):
    """1-D bilinear interp matrix, PyTorch nn.Upsample(align_corners=False)."""
    o = jnp.arange(out_size, dtype=jnp.float32)
    scale = in_size / out_size
    src = jnp.maximum((o + 0.5) * scale - 0.5, 0.0)   # torch clamps negatives to 0
    i0 = jnp.clip(jnp.floor(src).astype(jnp.int32), 0, in_size - 1)
    i1 = jnp.clip(i0 + 1, 0, in_size - 1)
    w1 = src - i0.astype(jnp.float32)
    w0 = 1.0 - w1
    r = jnp.zeros((out_size, in_size), jnp.float32)
    rows = jnp.arange(out_size)
    r = r.at[rows, i0].add(w0)
    r = r.at[rows, i1].add(w1)
    return r


# --------------------------- pure-JAX reference ------------------------------

def _ref_conv(x, w, b, k, stride=1):
    if k == 1:
        w = w.reshape(1, 1, *w.shape)
    pad = "SAME" if stride == 1 else "VALID"
    y = lax.conv_general_dilated(
        x, w, window_strides=(stride, stride), padding=pad,
        dimension_numbers=("NHWC", "HWIO", "NHWC"))
    return y + b


def fpn_reference(params, c3, c4, c5, rh45, rw45, rh34, rw34):
    def up_add(xc, lat, rh, rw):
        up = jnp.einsum("oh,pw,nhwc->nopc", rh, rw, xc)
        return up + lat

    p6 = _ref_conv(c5, params["c5_conv3_w"], params["c5_conv3_b"], 1, stride=2)
    p7 = _ref_conv(p6, params["c5_conv4_w"], params["c5_conv4_b"], 1, stride=2)
    c5_conv = _ref_conv(c5, params["c5_conv1_w"], params["c5_conv1_b"], 1)
    p5 = _ref_conv(c5_conv, params["c5_conv2_w"], params["c5_conv2_b"], 3)
    lat4 = _ref_conv(c4, params["c4_conv1_w"], params["c4_conv1_b"], 1)
    c5_c4 = up_add(c5_conv, lat4, rh45, rw45)
    p4 = _ref_conv(c5_c4, params["c4_conv2_w"], params["c4_conv2_b"], 3)
    lat3 = _ref_conv(c3, params["c3_conv1_w"], params["c3_conv1_b"], 1)
    c4_c3 = up_add(c5_c4, lat3, rh34, rw34)
    p3 = _ref_conv(c4_c3, params["c3_conv2_w"], params["c3_conv2_b"], 3)
    return p3, p4, p5, p6, p7


# --------------------------------- main --------------------------------------

if __name__ == "__main__":
    key = jax.random.PRNGKey(0)
    kp, k3, k4, k5 = jax.random.split(key, 4)

    N = 2
    input_sizes = (16, 8, 4)          # (c3, c4, c5) spatial sizes (H == W)
    input_channels = (8, 16, 32)      # (c3, c4, c5) channels (small, synthetic)

    # PyTorch-convention NCHW inputs.
    c3_nchw = jax.random.normal(k3, (N, input_channels[0], 16, 16), jnp.float32)
    c4_nchw = jax.random.normal(k4, (N, input_channels[1], 8, 8), jnp.float32)
    c5_nchw = jax.random.normal(k5, (N, input_channels[2], 4, 4), jnp.float32)

    # layout: NCHW -> NHWC for the TPU kernels.
    c3 = jnp.transpose(c3_nchw, (0, 2, 3, 1))
    c4 = jnp.transpose(c4_nchw, (0, 2, 3, 1))
    c5 = jnp.transpose(c5_nchw, (0, 2, 3, 1))

    params = init_fpn_params(kp, input_channels)

    # Separable bilinear-upsample matrices (PyTorch align_corners=False).
    rh45 = bilinear_matrix(8, 4)
    rw45 = bilinear_matrix(8, 4)
    rh34 = bilinear_matrix(16, 8)
    rw34 = bilinear_matrix(16, 8)

    outs = jax.block_until_ready(
        fpn_forward(params, c3, c4, c5, rh45, rw45, rh34, rw34))
    refs = jax.block_until_ready(
        fpn_reference(params, c3, c4, c5, rh45, rw45, rh34, rw34))

    names = ("p3", "p4", "p5", "p6", "p7")
    for name, o, r in zip(names, outs, refs):
        assert o.shape == r.shape, (name, o.shape, r.shape)
        err = float(jnp.max(jnp.abs(o - r)))
        assert err < 1e-3, f"{name} mismatch: max abs err {err}"

    print("KERNEL_OK")
</pallas_src>

<mosaic_0001>
module attributes {stable_mosaic.version = 11 : i64} {
  func.func @_p6p7_kernel(%arg0: i32, %arg1: memref<8x32xf32, #tpu.memory_space<vmem>>, %arg2: memref<2x32xf32, #tpu.memory_space<vmem>>, %arg3: memref<32x256xf32, #tpu.memory_space<vmem>>, %arg4: memref<1x256xf32, #tpu.memory_space<vmem>>, %arg5: memref<256x256xf32, #tpu.memory_space<vmem>>, %arg6: memref<1x256xf32, #tpu.memory_space<vmem>>, %arg7: memref<8x256xf32, #tpu.memory_space<vmem>>, %arg8: memref<2x256xf32, #tpu.memory_space<vmem>>) attributes {dimension_semantics = [#tpu.dimension_semantics<arbitrary>], iteration_bounds = array<i64: 1>, scalar_prefetch = 0 : i64, scratch_operands = 0 : i64, tpu.core_type = #tpu.core_type<tc>, window_params = [{pipeline_mode = #tpu.pipeline_mode<synchronous>, transform_indices = @transform_0, window_bounds = array<i64: 8, 32>}, {pipeline_mode = #tpu.pipeline_mode<synchronous>, transform_indices = @transform_1, window_bounds = array<i64: 2, 32>}, {pipeline_mode = #tpu.pipeline_mode<synchronous>, transform_indices = @transform_2, window_bounds = array<i64: 32, 256>}, {pipeline_mode = #tpu.pipeline_mode<synchronous>, transform_indices = @transform_3, window_bounds = array<i64: 1, 256>}, {pipeline_mode = #tpu.pipeline_mode<synchronous>, transform_indices = @transform_4, window_bounds = array<i64: 256, 256>}, {pipeline_mode = #tpu.pipeline_mode<synchronous>, transform_indices = @transform_5, window_bounds = array<i64: 1, 256>}, {pipeline_mode = #tpu.pipeline_mode<synchronous>, transform_indices = @transform_6, window_bounds = array<i64: 8, 256>}, {pipeline_mode = #tpu.pipeline_mode<synchronous>, transform_indices = @transform_7, window_bounds = array<i64: 2, 256>}]} {
    %c0 = arith.constant 0 : index
    %c0_0 = arith.constant 0 : index
    %0 = vector.load %arg1[%c0, %c0_0] : memref<8x32xf32, #tpu.memory_space<vmem>>, vector<8x32xf32>
    %c0_1 = arith.constant 0 : index
    %c0_2 = arith.constant 0 : index
    %1 = vector.load %arg3[%c0_1, %c0_2] : memref<32x256xf32, #tpu.memory_space<vmem>>, vector<32x256xf32>
    %cst = arith.constant dense<0.000000e+00> : vector<8x256xf32>
    %2 = tpu.matmul %0, %1, %cst {dimension_numbers = #tpu.dot_dimension_numbers<[1], [0], [0], [1], [0, 0, 1, 1], [], []>} : vector<8x32xf32>, vector<32x256xf32>, vector<8x256xf32> -> vector<8x256xf32>
    %c0_3 = arith.constant 0 : index
    %c0_4 = arith.constant 0 : index
    %3 = vector.load %arg4[%c0_3, %c0_4] : memref<1x256xf32, #tpu.memory_space<vmem>>, vector<1x256xf32>
    %4 = vector.broadcast %3 : vector<1x256xf32> to vector<8x256xf32>
    %5 = arith.addf %2, %4 : vector<8x256xf32>
    %c0_5 = arith.constant 0 : index
    %c0_6 = arith.constant 0 : index
    %6 = vector.load %arg7[%c0_5, %c0_6] : memref<8x256xf32, #tpu.memory_space<vmem>>, vector<8x256xf32>
    tpu.vector_store %arg7[%c0_5, %c0_6], %5 {strides = array<i32>} : memref<8x256xf32, #tpu.memory_space<vmem>>, vector<8x256xf32>,
    %c0_7 = arith.constant 0 : index
    %c0_8 = arith.constant 0 : index
    %7 = vector.load %arg2[%c0_7, %c0_8] : memref<2x32xf32, #tpu.memory_space<vmem>>, vector<2x32xf32>
    %c0_9 = arith.constant 0 : index
    %c0_10 = arith.constant 0 : index
    %8 = vector.load %arg3[%c0_9, %c0_10] : memref<32x256xf32, #tpu.memory_space<vmem>>, vector<32x256xf32>
    %cst_11 = arith.constant dense<0.000000e+00> : vector<2x256xf32>
    %9 = tpu.matmul %7, %8, %cst_11 {dimension_numbers = #tpu.dot_dimension_numbers<[1], [0], [0], [1], [0, 0, 1, 1], [], []>} : vector<2x32xf32>, vector<32x256xf32>, vector<2x256xf32> -> vector<2x256xf32>
    %c0_12 = arith.constant 0 : index
    %c0_13 = arith.constant 0 : index
    %10 = vector.load %arg4[%c0_12, %c0_13] : memref<1x256xf32, #tpu.memory_space<vmem>>, vector<1x256xf32>
    %11 = vector.broadcast %10 : vector<1x256xf32> to vector<2x256xf32>
    %12 = arith.addf %9, %11 : vector<2x256xf32>
    %c0_14 = arith.constant 0 : index
    %c0_15 = arith.constant 0 : index
    %13 = vector.load %arg5[%c0_14, %c0_15] : memref<256x256xf32, #tpu.memory_space<vmem>>, vector<256x256xf32>
    %cst_16 = arith.constant dense<0.000000e+00> : vector<2x256xf32>
    %14 = tpu.matmul %12, %13, %cst_16 {dimension_numbers = #tpu.dot_dimension_numbers<[1], [0], [0], [1], [0, 0, 1, 1], [], []>} : vector<2x256xf32>, vector<256x256xf32>, vector<2x256xf32> -> vector<2x256xf32>
    %c0_17 = arith.constant 0 : index
    %c0_18 = arith.constant 0 : index
    %15 = vector.load %arg6[%c0_17, %c0_18] : memref<1x256xf32, #tpu.memory_space<vmem>>, vector<1x256xf32>
    %16 = vector.broadcast %15 : vector<1x256xf32> to vector<2x256xf32>
    %17 = arith.addf %14, %16 : vector<2x256xf32>
    %c0_19 = arith.constant 0 : index
    %c0_20 = arith.constant 0 : index
    %18 = vector.load %arg8[%c0_19, %c0_20] : memref<2x256xf32, #tpu.memory_space<vmem>>, vector<2x256xf32>
    tpu.vector_store %arg8[%c0_19, %c0_20], %17 {strides = array<i32>} : memref<2x256xf32, #tpu.memory_space<vmem>>, vector<2x256xf32>,
    return
  }
  func.func @transform_0(%arg0: i32) -> (i32, i32) {
    %c0_i32 = arith.constant 0 : i32
    %c0_i32_0 = arith.constant 0 : i32
    %c0_i32_1 = arith.constant 0 : i32
    return %c0_i32, %c0_i32_0 : i32, i32
  }
  func.func @transform_1(%arg0: i32) -> (i32, i32) {
    %c0_i32 = arith.constant 0 : i32
    %c0_i32_0 = arith.constant 0 : i32
    %c0_i32_1 = arith.constant 0 : i32
    return %c0_i32, %c0_i32_0 : i32, i32
  }
  func.func @transform_2(%arg0: i32) -> (i32, i32) {
    %c0_i32 = arith.constant 0 : i32
    %c0_i32_0 = arith.constant 0 : i32
    %c0_i32_1 = arith.constant 0 : i32
    return %c0_i32, %c0_i32_0 : i32, i32
  }
  func.func @transform_3(%arg0: i32) -> (i32, i32) {
    %c0_i32 = arith.constant 0 : i32
    %c0_i32_0 = arith.constant 0 : i32
    %c0_i32_1 = arith.constant 0 : i32
    return %c0_i32, %c0_i32_0 : i32, i32
  }
  func.func @transform_4(%arg0: i32) -> (i32, i32) {
    %c0_i32 = arith.constant 0 : i32
    %c0_i32_0 = arith.constant 0 : i32
    %c0_i32_1 = arith.constant 0 : i32
    return %c0_i32, %c0_i32_0 : i32, i32
  }
  func.func @transform_5(%arg0: i32) -> (i32, i32) {
    %c0_i32 = arith.constant 0 : i32
    %c0_i32_0 = arith.constant 0 : i32
    %c0_i32_1 = arith.constant 0 : i32
    return %c0_i32, %c0_i32_0 : i32, i32
  }
  func.func @transform_6(%arg0: i32) -> (i32, i32) {
    %c0_i32 = arith.constant 0 : i32
    %c0_i32_0 = arith.constant 0 : i32
    %c0_i32_1 = arith.constant 0 : i32
    return %c0_i32, %c0_i32_0 : i32, i32
  }
  func.func @transform_7(%arg0: i32) -> (i32, i32) {
    %c0_i32 = arith.constant 0 : i32
    %c0_i32_0 = arith.constant 0 : i32
    %c0_i32_1 = arith.constant 0 : i32
    return %c0_i32, %c0_i32_0 : i32, i32
  }
}

</mosaic_0001>

<bundles_post_ra>
// kernel: tpu_custom_call.1
= control target key start
LH: loop header
LB: loop body
LE: loop exit
PB: predicated region body
PF: predicated region fallthrough
CT: control target
= control target key end

     0   :  { %13 = vsyncpa [#allocation3], 0  ;;  %s785_s0 = inlined_call_operand.hbm [shape: f32[8,32], index: 0, kind: input, shape index: {}]   ;;  %s786_s1 = inlined_call_operand.vmem [shape: f32[2,32], index: 1, kind: input, shape index: {}]   ;;  %s787_s2 = inlined_call_operand.hbm [shape: f32[32,256], index: 2, kind: input, shape index: {}]   ;;  %s788_s3 = inlined_call_operand.vmem [shape: f32[1,256], index: 3, kind: input, shape index: {}]   ;;  %s789_s4 = inlined_call_operand.hbm [shape: f32[256,256], index: 4, kind: input, shape index: {}]   ;;  %s790_s5 = inlined_call_operand.vmem [shape: f32[1,256], index: 5, kind: input, shape index: {}]   ;;  %s791_s6 = inlined_call_operand.hbm [shape: f32[8,256], index: 6, kind: output, shape index: {0}]   ;;  %s792_s7 = inlined_call_operand.hbm [shape: f32[2,256], index: 7, kind: output, shape index: {1}]  }
   0x1   :  { %14 = vsyncpa [#allocation6], 0 }
   0x2   :  { %15 = vsyncpa [#allocation4], 0 }
   0x3   :  { %16 = vsyncpa [#allocation10], 0  ;;  %s657_s24 = smov [#allocation5]   ;;  %s539_s28 = scalar_lea.hbm %s787_s2, 1024 }
   0x4   :  { %s34_s25 = sshll.u32 %s657_s24, 4  ;;  %p540_p0 = scmp.ne.s32.totalorder %s787_s2, %s539_s28  ;;  %s35_s25 = int_to_ptr.vmem [resolvable:$true] %s34_s25 }
   0x5   :  { %p543_p1 = scmp.lt.u32.totalorder %s539_s28, %s787_s2 }
   0x7   :  { %p545_p2 = pnand %p543_p1, %p540_p0 }
   0x9   :  { %548 = shalt.err (!%p545_p2)
}
   0xa   :  { %s549_s10 = scalar_lea.vmem %s35_s25, 1024  ;;  %p554_p4 = scmp.lt.s32.totalorder %s35_s25, %s35_s25 }
   0xb   :  { %p550_p3 = scmp.ne.s32.totalorder %s35_s25, %s549_s10  ;;  %p555_p5 = scmp.lt.s32.totalorder %s549_s10, %s549_s10 }
   0xd   :  { %p556_p6 = por %p555_p5, %p554_p4 }
   0xf   :  { %p557_p7 = pnand %p556_p6, %p550_p3 }
  0x11   :  { %560 = shalt.err (!%p557_p7)
}
  0x12   :  { %s658_s11 = smov 256   ;;  %s659_s12 = smov 16  }
  0x13   :  { %40 = dma.hbm_to_vmem [thread:$0]  %s787_s2, 1024, %s35_s25, [#allocation6], %s658_s11, %s658_s11, %s659_s12  }
  0x14   :  { %s660_s15 = smov [#allocation2]   ;;  %s661_s17 = smov [#allocation7]  }
  0x15   :  { %s23_s16 = sshll.u32 %s660_s15, 4  ;;  %s48_s18 = sshll.u32 %s661_s17, 4  ;;  %s24_s16 = int_to_ptr.vmem [resolvable:$true] %s23_s16  ;;  %s49_s18 = int_to_ptr.vmem [resolvable:$true] %s48_s18 }
  0x16   :  { %s561_s21 = scalar_lea.hbm %s785_s0, 128 }
  0x17   :  { %p562_p8 = scmp.ne.s32.totalorder %s785_s0, %s561_s21  ;;  %p565_p9 = scmp.lt.u32.totalorder %s561_s21, %s785_s0 }
  0x19   :  { %p567_p10 = pnand %p565_p9, %p562_p8 }
  0x1b   :  { %570 = shalt.err (!%p567_p10)
}
  0x1c   :  { %s571_s2 = scalar_lea.vmem %s24_s16, 128  ;;  %p576_p12 = scmp.lt.s32.totalorder %s24_s16, %s24_s16 }
  0x1d   :  { %p572_p11 = scmp.ne.s32.totalorder %s24_s16, %s571_s2  ;;  %p577_p13 = scmp.lt.s32.totalorder %s571_s2, %s571_s2 }
  0x1f   :  { %p578_p0 = por %p577_p13, %p576_p12 }
  0x21   :  { %p579_p1 = pnand %p578_p0, %p572_p11 }
  0x23   :  { %582 = shalt.err (!%p579_p1)
}
  0x24   :  { %26 = dma.hbm_to_vmem [thread:$0]  %s785_s0, 128, %s24_s16, [#allocation3]  }
  0x25   :  { %s583_s30 = scalar_lea.hbm %s789_s4, 8192 }
  0x26   :  { %p584_p2 = scmp.ne.s32.totalorder %s789_s4, %s583_s30  ;;  %p587_p3 = scmp.lt.u32.totalorder %s583_s30, %s789_s4 }
  0x28   :  { %p589_p4 = pnand %p587_p3, %p584_p2 }
  0x2a   :  { %592 = shalt.err (!%p589_p4)
}
  0x2b   :  { %s593_s14 = scalar_lea.vmem %s49_s18, 8192  ;;  %p598_p6 = scmp.lt.s32.totalorder %s49_s18, %s49_s18 }
  0x2c   :  { %p594_p5 = scmp.ne.s32.totalorder %s49_s18, %s593_s14  ;;  %p599_p7 = scmp.lt.s32.totalorder %s593_s14, %s593_s14 }
  0x2e   :  { %p600_p8 = por %p599_p7, %p598_p6 }
  0x30   :  { %p601_p9 = pnand %p600_p8, %p594_p5 }
  0x32   :  { %604 = shalt.err (!%p601_p9)
}
  0x33   :  { %54 = dma.hbm_to_vmem [thread:$0]  %s789_s4, 8192, %s49_s18, [#allocation6], %s658_s11, %s658_s11, %s659_s12  }
  0x34   :  { %649 = dma.done.wait [#allocation3], 128  }
  0x35   :  { %650 = vsyncadd [#allocation3], 4294967168 }
  0x36   :  { %651 = dma.done.wait [#allocation6], 9216  }
  0x37   :  { %652 = vsyncadd [#allocation6], 4294958080  ;;  %v662_v0 = vmov 0.0   ;;  %v68_v1 = vld [vmem:[#allocation5 + $0x8] sm:$0xff]  ;;  %v70_v2 = vld [vmem:[#allocation5 + $0x18] sm:$0xff]  ;;  %vm87_vm0 = vcmask 261120  }
  0x38   :  { %155 = vmatprep.mubr.f32.mxu1 %v662_v0  ;;  %v67_v3 = vld [vmem:[#allocation5] sm:$0xff]  ;;  %v451_v4 = vpack.c.bf16 %v70_v2, %v68_v1  ;;  %v69_v5 = vld [vmem:[#allocation5 + $0x10] sm:$0xff]  ;;  %v72_v6 = vld [vmem:[#allocation5 + $0x28] sm:$0xff]  ;;  %s663_s18 = smov [#allocation8]  }
  0x39   :  { %v74_v7 = vld [vmem:[#allocation5 + $0x38] sm:$0xff]  ;;  %v453_v8 = vpack.c.bf16 %v69_v5, %v67_v3  ;;  %v71_v10 = vld [vmem:[#allocation5 + $0x20] sm:$0xff]  ;;  %v73_v11 = vld [vmem:[#allocation5 + $0x30] sm:$0xff]  ;;  %s424_s19 = sshll.u32 %s663_s18, 4  ;;  %s425_s19 = int_to_ptr.vmem [resolvable:$true] %s424_s19 }
  0x3a   :  { %v455_v9 = vpack.c.bf16 %v74_v7, %v72_v6  ;;  %452 = vmatprep.subr.bf16.mxu1 %v451_v4  ;;  %v260_v12 = vld [vmem:[#allocation7 + $0x8] sm:$0xff]  ;;  %v262_v13 = vld [vmem:[#allocation7 + $0x18] sm:$0xff]  ;;  %v457_v14 = vpack.c.bf16 %v73_v11, %v71_v10  ;;  %v259_v16 = vld [vmem:[#allocation7] sm:$0xff]  ;;  %s605_s20 = scalar_lea.vmem %s425_s19, 256  ;;  %p610_p11 = scmp.lt.s32.totalorder %s425_s19, %s425_s19 }
  0x3b   :  { %454 = vmatpush1.bf16.msra.mxu1 %v453_v8  ;;  %v467_v15 = vpack.c.bf16 %v262_v13, %v260_v12  ;;  %v261_v17 = vld [vmem:[#allocation7 + $0x10] sm:$0xff]  ;;  %v264_v18 = vld [vmem:[#allocation7 + $0x28] sm:$0xff]  ;;  %v266_v20 = vld [vmem:[#allocation7 + $0x38] sm:$0xff]  ;;  %p606_p10 = scmp.ne.s32.totalorder %s425_s19, %s605_s20  ;;  %p611_p12 = scmp.lt.s32.totalorder %s605_s20, %s605_s20 }
  0x3c   :  { %456 = vmatprep.subr.bf16.mxu1 %v455_v9  ;;  %v469_v19 = vpack.c.bf16 %v261_v17, %v259_v16  ;;  %v263_v21 = vld [vmem:[#allocation7 + $0x20] sm:$0xff]  ;;  %v265_v22 = vld [vmem:[#allocation7 + $0x30] sm:$0xff]  ;;  %v471_v23 = vpack.c.bf16 %v266_v20, %v264_v18  ;;  %v268_v24 = vld [vmem:[#allocation7 + $0x48] sm:$0xff] }
  0x3d   :  { %468 = vmatprep.subr.bf16.mxu0 %v467_v15  ;;  %v270_v25 = vld [vmem:[#allocation7 + $0x58] sm:$0xff]  ;;  %v473_v26 = vpack.c.bf16 %v265_v22, %v263_v21  ;;  %v267_v28 = vld [vmem:[#allocation7 + $0x40] sm:$0xff]  ;;  %v269_v29 = vld [vmem:[#allocation7 + $0x50] sm:$0xff]  ;;  %p612_p13 = por %p611_p12, %p610_p11 }
  0x3e   :  { %470 = vmatpush1.bf16.msra.mxu0 %v469_v19  ;;  %v66_v27 = vld [vmem:[#allocation2] sm:$0xff]  ;;  %v475_v30 = vpack.c.bf16 %v270_v25, %v268_v24  ;;  %v272_v31 = vld [vmem:[#allocation7 + $0x68] sm:$0xff]  ;;  %v477_v33 = vpack.c.bf16 %v269_v29, %v267_v28  ;;  %v271_v35 = vld [vmem:[#allocation7 + $0x60] sm:$0xff] }
  0x3f   :  { %458 = vmatpush1.bf16.msra.mxu1 %v457_v14  ;;  %472 = vmatprep.subr.bf16.mxu0 %v471_v23  ;;  %v274_v32 = vld [vmem:[#allocation7 + $0x78] sm:$0xff]  ;;  %v273_v36 = vld [vmem:[#allocation7 + $0x70] sm:$0xff]  ;;  %v276_v37 = vld [vmem:[#allocation7 + $0x88] sm:$0xff]  ;;  %p613_p0 = pnand %p612_p13, %p606_p10 }
  0x40   :  { %460 = vmatprep.subr.bf16.mxu1 %v451_v4  ;;  %v479_v34 = vpack.c.bf16 %v274_v32, %v272_v31  ;;  %v278_v38 = vld [vmem:[#allocation7 + $0x98] sm:$0xff]  ;;  %v481_v39 = vpack.c.bf16 %v273_v36, %v271_v35  ;;  %v275_v42 = vld [vmem:[#allocation7 + $0x80] sm:$0xff]  ;;  %v277_v43 = vld [vmem:[#allocation7 + $0x90] sm:$0xff] }
  0x41   :  { %v164_v40 = vld [vmem:[%s786_s1] sm:$0x3]  ;;  %v483_v41 = vpack.c.bf16 %v278_v38, %v276_v37  ;;  %v280_v44 = vld [vmem:[#allocation7 + $0xa8] sm:$0xff]  ;;  %v485_v46 = vpack.c.bf16 %v277_v43, %v275_v42  ;;  %v279_v48 = vld [vmem:[#allocation7 + $0xa0] sm:$0xff] }
  0x42   :  { %448 = vmatmul.mubr.msk.f32.vlgmr.msra.gmra.mrb[0].mxu1 %vm87_vm0, %v66_v27  ;;  %474 = vmatpush1.bf16.msra.mxu0 %v473_v26  ;;  %v282_v45 = vld [vmem:[#allocation7 + $0xb8] sm:$0xff]  ;;  %v281_v49 = vld [vmem:[#allocation7 + $0xb0] sm:$0xff]  ;;  %v284_v50 = vld [vmem:[#allocation7 + $0xc8] sm:$0xff] }
  0x43   :  { %462 = vmatpush1.bf16.msra.mxu1 %v453_v8  ;;  %252 = vmatprep.mubr.f32.mxu1 %v662_v0  ;;  %v487_v47 = vpack.c.bf16 %v282_v45, %v280_v44  ;;  %v286_v51 = vld [vmem:[#allocation7 + $0xd8] sm:$0xff]  ;;  %v489_v52 = vpack.c.bf16 %v281_v49, %v279_v48  ;;  %v283_v54 = vld [vmem:[#allocation7 + $0xc0] sm:$0xff]  ;;  %v285_v55 = vld [vmem:[#allocation7 + $0xd0] sm:$0xff] }
  0x44   :  { %464 = vmatprep.subr.bf16.mxu1 %v455_v9  ;;  %476 = vmatprep.subr.bf16.mxu0 %v475_v30  ;;  %v491_v53 = vpack.c.bf16 %v286_v51, %v284_v50  ;;  %v288_v56 = vld [vmem:[#allocation7 + $0xe8] sm:$0xff]  ;;  %v290_v57 = vld [vmem:[#allocation7 + $0xf8] sm:$0xff]  ;;  %v493_v58 = vpack.c.bf16 %v285_v55, %v283_v54  ;;  %v287_v60 = vld [vmem:[#allocation7 + $0xe0] sm:$0xff] }
  0x45   :  { %v495_v59 = vpack.c.bf16 %v290_v57, %v288_v56  ;;  %v289_v61 = vld [vmem:[#allocation7 + $0xf0] sm:$0xff]  ;;  %v292_v62 = vld [vmem:[#allocation7 + $0x108] sm:$0xff]  ;;  %v294_v63 = vld [vmem:[#allocation7 + $0x118] sm:$0xff] }
  0x46   :  { %478 = vmatpush1.bf16.msra.mxu0 %v477_v33  ;;  %v497_v0 = vpack.c.bf16 %v289_v61, %v287_v60  ;;  %v499_v1 = vpack.c.bf16 %v294_v63, %v292_v62  ;;  %v291_v2 = vld [vmem:[#allocation7 + $0x100] sm:$0xff]  ;;  %v293_v3 = vld [vmem:[#allocation7 + $0x110] sm:$0xff]  ;;  %v296_v4 = vld [vmem:[#allocation7 + $0x128] sm:$0xff] }
  0x47   :  { %466 = vmatpush1.bf16.msra.mxu1 %v457_v14  ;;  %480 = vmatprep.subr.bf16.mxu0 %v479_v34  ;;  %v298_v5 = vld [vmem:[#allocation7 + $0x138] sm:$0xff]  ;;  %v501_v6 = vpack.c.bf16 %v293_v3, %v291_v2  ;;  %v295_v8 = vld [vmem:[#allocation7 + $0x120] sm:$0xff]  ;;  %v297_v9 = vld [vmem:[#allocation7 + $0x130] sm:$0xff] }
  0x48   :  { %v503_v7 = vpack.c.bf16 %v298_v5, %v296_v4  ;;  %v300_v10 = vld [vmem:[#allocation7 + $0x148] sm:$0xff]  ;;  %v302_v11 = vld [vmem:[#allocation7 + $0x158] sm:$0xff]  ;;  %v505_v12 = vpack.c.bf16 %v297_v9, %v295_v8  ;;  %v299_v14 = vld [vmem:[#allocation7 + $0x140] sm:$0xff] }
  0x49   :  { %v507_v13 = vpack.c.bf16 %v302_v11, %v300_v10  ;;  %v301_v15 = vld [vmem:[#allocation7 + $0x150] sm:$0xff]  ;;  %v304_v16 = vld [vmem:[#allocation7 + $0x168] sm:$0xff]  ;;  %v306_v17 = vld [vmem:[#allocation7 + $0x178] sm:$0xff] }
  0x4a   :  { %449 = vmatmul.mubr.msk.f32.vlgmr.msra.gmra.mrb[2].mxu1 %vm87_vm0, %v164_v40  ;;  %482 = vmatpush1.bf16.msra.mxu0 %v481_v39  ;;  %v509_v18 = vpack.c.bf16 %v301_v15, %v299_v14  ;;  %v511_v19 = vpack.c.bf16 %v306_v17, %v304_v16  ;;  %v303_v20 = vld [vmem:[#allocation7 + $0x160] sm:$0xff]  ;;  %v305_v21 = vld [vmem:[#allocation7 + $0x170] sm:$0xff]  ;;  %v308_v22 = vld [vmem:[#allocation7 + $0x188] sm:$0xff] }
  0x4b   :  { %484 = vmatprep.subr.bf16.mxu0 %v483_v41  ;;  %v310_v23 = vld [vmem:[#allocation7 + $0x198] sm:$0xff]  ;;  %v513_v24 = vpack.c.bf16 %v305_v21, %v303_v20  ;;  %v307_v26 = vld [vmem:[#allocation7 + $0x180] sm:$0xff]  ;;  %v309_v27 = vld [vmem:[#allocation7 + $0x190] sm:$0xff] }
  0x4c   :  { %v515_v25 = vpack.c.bf16 %v310_v23, %v308_v22  ;;  %v517_v28 = vpack.c.bf16 %v309_v27, %v307_v26  ;;  %v312_v29 = vld [vmem:[#allocation7 + $0x1a8] sm:$0xff]  ;;  %v314_v30 = vld [vmem:[#allocation7 + $0x1b8] sm:$0xff]  ;;  %v311_v32 = vld [vmem:[#allocation7 + $0x1a0] sm:$0xff] }
  0x4d   :  { %v519_v31 = vpack.c.bf16 %v314_v30, %v312_v29  ;;  %v313_v33 = vld [vmem:[#allocation7 + $0x1b0] sm:$0xff]  ;;  %v316_v35 = vld [vmem:[#allocation7 + $0x1c8] sm:$0xff]  ;;  %v318_v36 = vld [vmem:[#allocation7 + $0x1d8] sm:$0xff] }
  0x4e   :  { %486 = vmatpush1.bf16.msra.mxu0 %v485_v46  ;;  %v521_v34 = vpack.c.bf16 %v313_v33, %v311_v32  ;;  %v523_v37 = vpack.c.bf16 %v318_v36, %v316_v35  ;;  %v315_v38 = vld [vmem:[#allocation7 + $0x1c0] sm:$0xff]  ;;  %v317_v39 = vld [vmem:[#allocation7 + $0x1d0] sm:$0xff]  ;;  %v320_v41 = vld [vmem:[#allocation7 + $0x1e8] sm:$0xff] }
  0x4f   :  { %488 = vmatprep.subr.bf16.mxu0 %v487_v47  ;;  %v525_v40 = vpack.c.bf16 %v317_v39, %v315_v38  ;;  %v322_v42 = vld [vmem:[#allocation7 + $0x1f8] sm:$0xff]  ;;  %v319_v44 = vld [vmem:[#allocation7 + $0x1e0] sm:$0xff]  ;;  %v321_v45 = vld [vmem:[#allocation7 + $0x1f0] sm:$0xff]  ;;  %v77_v47 = vlaneseq }
  0x50   :  { %v527_v43 = vpack.c.bf16 %v322_v42, %v320_v41  ;;  %v529_v46 = vpack.c.bf16 %v321_v45, %v319_v44  ;;  %v75_v50 = vld [vmem:[%s788_s3] sm:$0x3] }
  0x51   :  { %v78_v48 = vshrl.u32 %v77_v47, 7 }
  0x52   :  { %490 = vmatpush1.bf16.msra.mxu0 %v489_v52 }
  0x53   :  { %492 = vmatprep.subr.bf16.mxu0 %v491_v53  ;;  %v79_v49 = vsub.s32 0, %v78_v48  ;;  %v83_v51 = vsub.s32 1, %v78_v48 }
  0x55   :  { %v80_v52 = vrot.slane %v75_v50, %v79_v49  ;;  %v84_v53 = vrot.slane %v75_v50, %v83_v51 }
  0x56   :  { %494 = vmatpush1.bf16.msra.mxu0 %v493_v58  ;;  %v173_v58 = vld [vmem:[%s788_s3] sm:$0x3] }
  0x57   :  { %496 = vmatprep.subr.bf16.mxu0 %v495_v59  ;;  %v182_v59 = vrot.slane %v173_v58, %v83_v51  ;;  %v178_v60 = vrot.slane %v173_v58, %v79_v49 }
  0x5a   :  { %498 = vmatpush1.bf16.msra.mxu0 %v497_v0 }
  0x5b   :  { %500 = vmatprep.subr.bf16.mxu0 %v499_v1 }
  0x5e   :  { %502 = vmatpush1.bf16.msra.mxu0 %v501_v6 }
  0x5f   :  { %504 = vmatprep.subr.bf16.mxu0 %v503_v7 }
  0x62   :  { %506 = vmatpush1.bf16.msra.mxu0 %v505_v12 }
  0x63   :  { %508 = vmatprep.subr.bf16.mxu0 %v507_v13 }
  0x66   :  { %510 = vmatpush1.bf16.msra.mxu0 %v509_v18 }
  0x67   :  { %512 = vmatprep.subr.bf16.mxu0 %v511_v19 }
  0x6a   :  { %514 = vmatpush1.bf16.msra.mxu0 %v513_v24 }
  0x6b   :  { %516 = vmatprep.subr.bf16.mxu0 %v515_v25 }
  0x6e   :  { %518 = vmatpush1.bf16.msra.mxu0 %v517_v28 }
  0x6f   :  { %520 = vmatprep.subr.bf16.mxu0 %v519_v31 }
  0x72   :  { %522 = vmatpush1.bf16.msra.mxu0 %v521_v34 }
  0x73   :  { %524 = vmatprep.subr.bf16.mxu0 %v523_v37 }
  0x76   :  { %526 = vmatpush1.bf16.msra.mxu0 %v525_v40 }
  0x77   :  { %528 = vmatprep.subr.bf16.mxu0 %v527_v43 }
  0x7a   :  { %530 = vmatpush1.bf16.msra.mxu0 %v529_v46 }
 0x115   :  { %v157_v54 = vpop.f32.mrb[0].mxu1 }
 0x116   :  { %v158_v55 = vadd.f32 %v157_v54, %v80_v52  ;;  %v159_v56 = vpop.f32.mrb[1].mxu1 }
 0x117   :  { %v160_v57 = vadd.f32 %v159_v56, %v84_v53 }
 0x118   :  { %162 = vst [vmem:[#allocation8] sm:$0xff] %v158_v55 }
 0x119   :  { %163 = vst [vmem:[#allocation8 + $0x8] sm:$0xff] %v160_v57 }
 0x11d   :  { %v254_v61 = vpop.f32.mrb[2].mxu1 }
 0x11e   :  { %v256_v62 = vpop.f32.mrb[3].mxu1  ;;  %v255_v0 = vadd.f32 %v254_v61, %v178_v60 }
 0x11f   :  { %v257_v63 = vadd.f32 %v256_v62, %v182_v59 }
 0x121   :  { %399 = vmatprep.mubr.f32.mxu0 %v257_v63 }
 0x122   :  { %400 = vmatmul.mubr.f32.vlgmr.msra.gmra.mrb[0].mxu0 %v255_v0 }
 0x123   :  { %616 = shalt.err (!%p613_p0)
}
 0x124   :  { %s617_s22 = scalar_lea.hbm %s791_s6, 256 }
 0x125   :  { %p618_p1 = scmp.ne.s32.totalorder %s791_s6, %s617_s22  ;;  %p621_p2 = scmp.lt.u32.totalorder %s617_s22, %s791_s6 }
 0x127   :  { %p623_p3 = pnand %p621_p2, %p618_p1 }
 0x129   :  { %626 = shalt.err (!%p623_p3)
}
 0x12a   :  { %427 = dma.vmem_to_hbm [thread:$0]  %s425_s19, 256, %s791_s6, [#allocation4]   ;;  %v323_v1 = vld [vmem:[%s790_s5] sm:$0x3] }
 0x12b   :  { %v328_v2 = vrot.slane %v323_v1, %v79_v49  ;;  %v332_v3 = vrot.slane %v323_v1, %v83_v51  ;;  %s664_s30 = smov [#allocation9]  }
 0x12c   :  { %s434_s8 = sshll.u32 %s664_s30, 4  ;;  %s435_s8 = int_to_ptr.vmem [resolvable:$true] %s434_s8 }
 0x12d   :  { %s627_s9 = scalar_lea.vmem %s435_s8, 64  ;;  %p632_p5 = scmp.lt.s32.totalorder %s435_s8, %s435_s8 }
 0x12e   :  { %p628_p4 = scmp.ne.s32.totalorder %s435_s8, %s627_s9  ;;  %p633_p6 = scmp.lt.s32.totalorder %s627_s9, %s627_s9 }
 0x130   :  { %p634_p7 = por %p633_p6, %p632_p5 }
 0x132   :  { %p635_p8 = pnand %p634_p7, %p628_p4 }
 0x1f5   :  { %v401_v4 = vpop.f32.mrb[0].mxu0 }
 0x1f6   :  { %v402_v5 = vadd.f32 %v401_v4, %v328_v2  ;;  %v403_v6 = vpop.f32.mrb[1].mxu0 }
 0x1f7   :  { %v404_v7 = vadd.f32 %v403_v6, %v332_v3 }
 0x1f9   :  { %v408_v8 = vcombine.low %v402_v5, %v404_v7 }
 0x1fb   :  { %450 = vst.sshfl [vmem:[#allocation9] sm:$0x33 pattern:$0x76325410] %v408_v8 }
 0x1fc   :  { %638 = shalt.err (!%p635_p8)
}
 0x1fd   :  { %s639_s10 = scalar_lea.hbm %s792_s7, 64 }
 0x1fe   :  { %p640_p9 = scmp.ne.s32.totalorder %s792_s7, %s639_s10  ;;  %p643_p10 = scmp.lt.u32.totalorder %s639_s10, %s792_s7 }
 0x200   :  { %p645_p11 = pnand %p643_p10, %p640_p9 }
 0x202   :  { %648 = shalt.err (!%p645_p11)
}
 0x203   :  { %437 = dma.vmem_to_hbm [thread:$0]  %s435_s8, 64, %s792_s7, [#allocation10]  }
 0x204   :  { %653 = dma.done.wait [#allocation4], 256  }
 0x205   :  { %654 = vsyncadd [#allocation4], 4294967040 }
 0x206   :  { %655 = dma.done.wait [#allocation10], 64  }
 0x207   :  { %656 = vsyncadd [#allocation10], 4294967232 }
 0x208   :  { %444 = vsyncpa [#allocation3], 1 }
 0x209   :  { %445 = vsyncpa [#allocation6], 1 }
 0x20a   :  { %446 = vsyncpa [#allocation4], 1 }
 0x20b   :  { %447 = vsyncpa [#allocation10], 1 }

</bundles_post_ra>
